<compile_context>
chip_gen: v7x
topology: tpu7x:2x2x1
jax: 0.10.0
libtpu: 0.0.40
codegen_flags: <defaults>
</compile_context>

<pallas_src>
import jax
import jax.numpy as jnp
from jax.experimental import pallas as pl
from jax.experimental.pallas import tpu as pltpu


def _sq_dist_kernel(user_ref, pos_ref, neg_ref, pos_out_ref, neg_out_ref):
    # (TB, D) tiles: elementwise (x - y)^2 on the VPU, row reduction on the XLU,
    # result written lane-dense as a (1, TB) row.
    u = user_ref[...]
    dp = u - pos_ref[...]
    dn = u - neg_ref[...]
    pos_out_ref[...] = jnp.sum(dp * dp, axis=1)[None, :]
    neg_out_ref[...] = jnp.sum(dn * dn, axis=1)[None, :]


def bpr_sq_distances(user_emb, pos_emb, neg_emb, *, tb=1024):
    """Pallas equivalent of Model.forward: returns (pos_dist, neg_dist), each (B, 1)."""
    B, D = user_emb.shape
    user_emb = user_emb.astype(jnp.float32)
    pos_emb = pos_emb.astype(jnp.float32)
    neg_emb = neg_emb.astype(jnp.float32)

    # --- tile-size selection (batch axis) ---
    # Double-buffered input footprint = 2 bufs * 3 inputs * tb * D * 4B; keep it
    # under ~18 MiB so it fits v7x's 32 MiB scoped / 64 MiB physical VMEM with
    # headroom, while still using large (>=128, ideally 512-2048 row) tiles.
    vmem_budget = 18 * 1024 * 1024
    tb_cap = max(128, (vmem_budget // (2 * 3 * D * 4)) // 128 * 128)
    tb = max(128, (min(tb, tb_cap) // 128) * 128)
    bp_min = pl.cdiv(B, 128) * 128
    tb = min(tb, bp_min)            # don't make the tile larger than padded B

    # Pad batch to a multiple of the tile so the ragged last tile is never live.
    Bp = pl.cdiv(B, tb) * tb
    if Bp != B:
        pad = ((0, Bp - B), (0, 0))
        user_emb = jnp.pad(user_emb, pad)
        pos_emb = jnp.pad(pos_emb, pad)
        neg_emb = jnp.pad(neg_emb, pad)
    num_tiles = Bp // tb

    in_spec = pl.BlockSpec((tb, D), lambda i: (i, 0))
    out_spec = pl.BlockSpec((1, tb), lambda i: (0, i))   # lane-dense output rows

    grid_spec = pltpu.PrefetchScalarGridSpec(
        num_scalar_prefetch=0,
        grid=(num_tiles,),
        in_specs=[in_spec, in_spec, in_spec],
        out_specs=[out_spec, out_spec],
    )

    pos_row, neg_row = pl.pallas_call(
        _sq_dist_kernel,
        out_shape=(
            jax.ShapeDtypeStruct((1, Bp), jnp.float32),
            jax.ShapeDtypeStruct((1, Bp), jnp.float32),
        ),
        grid_spec=grid_spec,
        compiler_params=pltpu.CompilerParams(
            dimension_semantics=("parallel",),        # shard batch across TCs (v7x)
            vmem_limit_bytes=32 * 1024 * 1024,
        ),
    )(user_emb, pos_emb, neg_emb)

    # (1, Bp) lane-dense kernel output -> (B, 1), matching torch's .sum(1).unsqueeze(1).
    pos_dist = pos_row.reshape(Bp, 1)[:B]
    neg_dist = neg_row.reshape(Bp, 1)[:B]
    return pos_dist, neg_dist


if __name__ == "__main__":
    # Deterministic synthetic setup mimicking Model.__init__ (normal(0, 0.01) embeddings).
    num_users, num_items, hidden_dim = 16, 16, 32
    batch = 8

    key = jax.random.PRNGKey(0)
    k_user_tbl, k_item_tbl, k_uidx, k_pidx, k_nidx = jax.random.split(key, 5)

    user_mu_embeddings = 0.01 * jax.random.normal(
        k_user_tbl, (num_users, hidden_dim), dtype=jnp.float32
    )
    item_mu_embeddings = 0.01 * jax.random.normal(
        k_item_tbl, (num_items, hidden_dim), dtype=jnp.float32
    )

    user_idx = jax.random.randint(k_uidx, (batch,), 0, num_users)
    pos_idx = jax.random.randint(k_pidx, (batch,), 0, num_items)
    neg_idx = jax.random.randint(k_nidx, (batch,), 0, num_items)

    user_emb = user_mu_embeddings[user_idx]  # (B, D)
    pos_emb = item_mu_embeddings[pos_idx]    # (B, D)
    neg_emb = item_mu_embeddings[neg_idx]    # (B, D)

    pos_dist, neg_dist = bpr_sq_distances(user_emb, pos_emb, neg_emb)
    jax.block_until_ready((pos_dist, neg_dist))

    # Reference check against plain JAX (same semantics as the torch forward).
    ref_pos = jnp.sum((user_emb - pos_emb) ** 2, axis=1, keepdims=True)
    ref_neg = jnp.sum((user_emb - neg_emb) ** 2, axis=1, keepdims=True)
    assert pos_dist.shape == (batch, 1) and neg_dist.shape == (batch, 1)
    assert jnp.allclose(pos_dist, ref_pos, atol=1e-6, rtol=1e-5)
    assert jnp.allclose(neg_dist, ref_neg, atol=1e-6, rtol=1e-5)

    # Secondary check: multi-tile grid + ragged (padded) last tile.
    B2 = 300
    k_a, k_b, k_c = jax.random.split(jax.random.PRNGKey(1), 3)
    u2 = jax.random.normal(k_a, (B2, hidden_dim), dtype=jnp.float32)
    p2 = jax.random.normal(k_b, (B2, hidden_dim), dtype=jnp.float32)
    n2 = jax.random.normal(k_c, (B2, hidden_dim), dtype=jnp.float32)
    pd2, nd2 = bpr_sq_distances(u2, p2, n2, tb=128)
    jax.block_until_ready((pd2, nd2))
    assert pd2.shape == (B2, 1) and nd2.shape == (B2, 1)
    assert jnp.allclose(pd2, jnp.sum((u2 - p2) ** 2, axis=1, keepdims=True),
                        atol=1e-4, rtol=1e-5)
    assert jnp.allclose(nd2, jnp.sum((u2 - n2) ** 2, axis=1, keepdims=True),
                        atol=1e-4, rtol=1e-5)

    print("KERNEL_OK")
</pallas_src>

<mosaic_0001>
module attributes {stable_mosaic.version = 11 : i64} {
  func.func @_sq_dist_kernel(%arg0: i32, %arg1: memref<128x32xf32, #tpu.memory_space<vmem>>, %arg2: memref<128x32xf32, #tpu.memory_space<vmem>>, %arg3: memref<128x32xf32, #tpu.memory_space<vmem>>, %arg4: memref<1x128xf32, #tpu.memory_space<vmem>>, %arg5: memref<1x128xf32, #tpu.memory_space<vmem>>) attributes {dimension_semantics = [#tpu.dimension_semantics<parallel>], iteration_bounds = array<i64: 1>, scalar_prefetch = 0 : i64, scratch_operands = 0 : i64, tpu.core_type = #tpu.core_type<tc>, window_params = [{transform_indices = @transform_0, window_bounds = array<i64: 128, 32>}, {transform_indices = @transform_1, window_bounds = array<i64: 128, 32>}, {transform_indices = @transform_2, window_bounds = array<i64: 128, 32>}, {transform_indices = @transform_3, window_bounds = array<i64: 1, 128>}, {transform_indices = @transform_4, window_bounds = array<i64: 1, 128>}]} {
    %c0 = arith.constant 0 : index
    %c0_0 = arith.constant 0 : index
    %0 = vector.load %arg1[%c0, %c0_0] : memref<128x32xf32, #tpu.memory_space<vmem>>, vector<128x32xf32>
    %c0_1 = arith.constant 0 : index
    %c0_2 = arith.constant 0 : index
    %1 = vector.load %arg2[%c0_1, %c0_2] : memref<128x32xf32, #tpu.memory_space<vmem>>, vector<128x32xf32>
    %2 = arith.subf %0, %1 : vector<128x32xf32>
    %c0_3 = arith.constant 0 : index
    %c0_4 = arith.constant 0 : index
    %3 = vector.load %arg3[%c0_3, %c0_4] : memref<128x32xf32, #tpu.memory_space<vmem>>, vector<128x32xf32>
    %4 = arith.subf %0, %3 : vector<128x32xf32>
    %5 = arith.mulf %2, %2 : vector<128x32xf32>
    %cst = arith.constant dense<0.000000e+00> : vector<128xf32>
    %6 = vector.multi_reduction <add>, %5, %cst [1] : vector<128x32xf32> to vector<128xf32>
    %7 = vector.shape_cast %6 : vector<128xf32> to vector<1x128xf32>
    %c0_5 = arith.constant 0 : index
    %c0_6 = arith.constant 0 : index
    %8 = vector.load %arg4[%c0_5, %c0_6] : memref<1x128xf32, #tpu.memory_space<vmem>>, vector<1x128xf32>
    tpu.vector_store %arg4[%c0_5, %c0_6], %7 {strides = array<i32>} : memref<1x128xf32, #tpu.memory_space<vmem>>, vector<1x128xf32>,
    %9 = arith.mulf %4, %4 : vector<128x32xf32>
    %cst_7 = arith.constant dense<0.000000e+00> : vector<128xf32>
    %10 = vector.multi_reduction <add>, %9, %cst_7 [1] : vector<128x32xf32> to vector<128xf32>
    %11 = vector.shape_cast %10 : vector<128xf32> to vector<1x128xf32>
    %c0_8 = arith.constant 0 : index
    %c0_9 = arith.constant 0 : index
    %12 = vector.load %arg5[%c0_8, %c0_9] : memref<1x128xf32, #tpu.memory_space<vmem>>, vector<1x128xf32>
    tpu.vector_store %arg5[%c0_8, %c0_9], %11 {strides = array<i32>} : memref<1x128xf32, #tpu.memory_space<vmem>>, vector<1x128xf32>,
    return
  }
  func.func @transform_0(%arg0: i32) -> (i32, i32) {
    %c0_i32 = arith.constant 0 : i32
    %c0_i32_0 = arith.constant 0 : i32
    return %arg0, %c0_i32 : i32, i32
  }
  func.func @transform_1(%arg0: i32) -> (i32, i32) {
    %c0_i32 = arith.constant 0 : i32
    %c0_i32_0 = arith.constant 0 : i32
    return %arg0, %c0_i32 : i32, i32
  }
  func.func @transform_2(%arg0: i32) -> (i32, i32) {
    %c0_i32 = arith.constant 0 : i32
    %c0_i32_0 = arith.constant 0 : i32
    return %arg0, %c0_i32 : i32, i32
  }
  func.func @transform_3(%arg0: i32) -> (i32, i32) {
    %c0_i32 = arith.constant 0 : i32
    %c0_i32_0 = arith.constant 0 : i32
    return %c0_i32, %arg0 : i32, i32
  }
  func.func @transform_4(%arg0: i32) -> (i32, i32) {
    %c0_i32 = arith.constant 0 : i32
    %c0_i32_0 = arith.constant 0 : i32
    return %c0_i32, %arg0 : i32, i32
  }
}

</mosaic_0001>

<bundles_post_ra>
// kernel: tpu_custom_call.1
= control target key start
LH: loop header
LB: loop body
LE: loop exit
PB: predicated region body
PF: predicated region fallthrough
CT: control target
= control target key end

     0   :  { %10 = vsyncpa [#allocation3], 0  ;;  %vm114_vm0 = vcmask 261120   ;;  %s898_s0 = inlined_call_operand.vmem [shape: f32[128,32], index: 0, kind: input, shape index: {}]   ;;  %s899_s1 = inlined_call_operand.vmem [shape: f32[128,32], index: 1, kind: input, shape index: {}]   ;;  %s900_s2 = inlined_call_operand.vmem [shape: f32[128,32], index: 2, kind: input, shape index: {}]   ;;  %s901_s3 = inlined_call_operand.hbm [shape: f32[1,128], index: 3, kind: output, shape index: {0}]   ;;  %s902_s4 = inlined_call_operand.hbm [shape: f32[1,128], index: 4, kind: output, shape index: {1}]  }
   0x1   :  { %v18_v0 = vld [vmem:[%s898_s0] sm:$0xff]  ;;  %v19_v5 = vld [vmem:[%s898_s0 + $0x8] sm:$0xff]  ;;  %v20_v10 = vld [vmem:[%s898_s0 + $0x10] sm:$0xff] }
   0x2   :  { %v66_v1 = vld [vmem:[%s900_s2] sm:$0xff]  ;;  %v67_v6 = vld [vmem:[%s900_s2 + $0x8] sm:$0xff]  ;;  %v68_v11 = vld [vmem:[%s900_s2 + $0x10] sm:$0xff] }
   0x3   :  { %v34_v2 = vld [vmem:[%s899_s1] sm:$0xff]  ;;  %v82_v3 = vsub.f32 %v18_v0, %v66_v1  ;;  %v35_v7 = vld [vmem:[%s899_s1 + $0x8] sm:$0xff]  ;;  %v83_v8 = vsub.f32 %v19_v5, %v67_v6  ;;  %v36_v12 = vld [vmem:[%s899_s1 + $0x10] sm:$0xff]  ;;  %v84_v15 = vsub.f32 %v20_v10, %v68_v11 }
   0x4   :  { %v50_v4 = vsub.f32 %v18_v0, %v34_v2  ;;  %v51_v9 = vsub.f32 %v19_v5, %v35_v7  ;;  %v52_v16 = vsub.f32 %v20_v10, %v36_v12  ;;  %v21_v17 = vld [vmem:[%s898_s0 + $0x18] sm:$0xff]  ;;  %v22_v30 = vld [vmem:[%s898_s0 + $0x20] sm:$0xff]  ;;  %v23_v39 = vld [vmem:[%s898_s0 + $0x28] sm:$0xff] }
   0x5   :  { %v292_v13 = vmul.f32 %v82_v3, %v82_v3  ;;  %v69_v18 = vld [vmem:[%s900_s2 + $0x18] sm:$0xff]  ;;  %v293_v20 = vmul.f32 %v83_v8, %v83_v8  ;;  %v294_v28 = vmul.f32 %v84_v15, %v84_v15  ;;  %v70_v31 = vld [vmem:[%s900_s2 + $0x20] sm:$0xff]  ;;  %v71_v40 = vld [vmem:[%s900_s2 + $0x28] sm:$0xff] }
   0x6   :  { %v98_v14 = vmul.f32 %v50_v4, %v50_v4  ;;  %v37_v19 = vld [vmem:[%s899_s1 + $0x18] sm:$0xff]  ;;  %v99_v21 = vmul.f32 %v51_v9, %v51_v9  ;;  %v85_v24 = vsub.f32 %v21_v17, %v69_v18  ;;  %v100_v29 = vmul.f32 %v52_v16, %v52_v16  ;;  %v38_v32 = vld [vmem:[%s899_s1 + $0x20] sm:$0xff]  ;;  %v39_v41 = vld [vmem:[%s899_s1 + $0x28] sm:$0xff] }
   0x7   :  { %v308_v22 = vsel %vm114_vm0, %v292_v13, 0.0  ;;  %v53_v25 = vsub.f32 %v21_v17, %v37_v19  ;;  %v311_v26 = vsel %vm114_vm0, %v293_v20, 0.0  ;;  %v314_v35 = vsel %vm114_vm0, %v294_v28, 0.0  ;;  %v24_v48 = vld [vmem:[%s898_s0 + $0x30] sm:$0xff] }
   0x8   :  { %v115_v23 = vsel %vm114_vm0, %v98_v14, 0.0  ;;  %309 = vadd.xlane.f32.xlu1 %v308_v22  ;;  %v118_v27 = vsel %vm114_vm0, %v99_v21, 0.0  ;;  %v295_v33 = vmul.f32 %v85_v24, %v85_v24  ;;  %v121_v36 = vsel %vm114_vm0, %v100_v29, 0.0  ;;  %v72_v49 = vld [vmem:[%s900_s2 + $0x30] sm:$0xff] }
   0x9   :  { %116 = vadd.xlane.f32.xlu0 %v115_v23  ;;  %v101_v34 = vmul.f32 %v53_v25, %v53_v25  ;;  %v86_v37 = vsub.f32 %v22_v30, %v70_v31  ;;  %v54_v38 = vsub.f32 %v22_v30, %v38_v32  ;;  %v87_v46 = vsub.f32 %v23_v39, %v71_v40  ;;  %v40_v50 = vld [vmem:[%s899_s1 + $0x30] sm:$0xff] }
   0xa   :  { %v317_v42 = vsel %vm114_vm0, %v295_v33, 0.0  ;;  %v55_v47 = vsub.f32 %v23_v39, %v39_v41 }
   0xb   :  { %v124_v43 = vsel %vm114_vm0, %v101_v34, 0.0  ;;  %v296_v44 = vmul.f32 %v86_v37, %v86_v37  ;;  %v102_v45 = vmul.f32 %v54_v38, %v54_v38 }
   0xc   :  { %312 = vadd.xlane.f32.xlu1 %v311_v26 }
   0xd   :  { %119 = vadd.xlane.f32.xlu0 %v118_v27 }
  0x10   :  { %315 = vadd.xlane.f32.xlu1 %v314_v35 }
  0x11   :  { %122 = vadd.xlane.f32.xlu0 %v121_v36 }
  0x12   :  { %11 = vsyncpa [#allocation5], 0  ;;  %v88_v51 = vsub.f32 %v24_v48, %v72_v49  ;;  %v56_v52 = vsub.f32 %v24_v48, %v40_v50  ;;  %v320_v53 = vsel %vm114_vm0, %v296_v44, 0.0  ;;  %v127_v54 = vsel %vm114_vm0, %v102_v45, 0.0  ;;  %v25_v57 = vld [vmem:[%s898_s0 + $0x38] sm:$0xff]  ;;  %v26_v2 = vld [vmem:[%s898_s0 + $0x40] sm:$0xff] }
  0x13   :  { %v297_v55 = vmul.f32 %v87_v46, %v87_v46  ;;  %v103_v56 = vmul.f32 %v55_v47, %v55_v47  ;;  %v73_v58 = vld [vmem:[%s900_s2 + $0x38] sm:$0xff]  ;;  %v74_v3 = vld [vmem:[%s900_s2 + $0x40] sm:$0xff]  ;;  %v27_v11 = vld [vmem:[%s898_s0 + $0x48] sm:$0xff]  ;;  %vm190_vm1 = vcmask 130112   ;;  %vm197_vm2 = vcmask 195712  }
  0x14   :  { %318 = vadd.xlane.f32.xlu1 %v317_v42  ;;  %v41_v59 = vld [vmem:[%s899_s1 + $0x38] sm:$0xff]  ;;  %v298_v60 = vmul.f32 %v88_v51, %v88_v51  ;;  %v89_v61 = vsub.f32 %v25_v57, %v73_v58  ;;  %v104_v0 = vmul.f32 %v56_v52, %v56_v52  ;;  %v42_v4 = vld [vmem:[%s899_s1 + $0x40] sm:$0xff]  ;;  %v90_v9 = vsub.f32 %v26_v2, %v74_v3  ;;  %v75_v12 = vld [vmem:[%s900_s2 + $0x48] sm:$0xff] }
  0x15   :  { %125 = vadd.xlane.f32.xlu0 %v124_v43  ;;  %v323_v62 = vsel %vm114_vm0, %v297_v55, 0.0  ;;  %v130_v63 = vsel %vm114_vm0, %v103_v56, 0.0  ;;  %v57_v1 = vsub.f32 %v25_v57, %v41_v59  ;;  %v58_v10 = vsub.f32 %v26_v2, %v42_v4  ;;  %v43_v13 = vld [vmem:[%s899_s1 + $0x48] sm:$0xff]  ;;  %v28_v20 = vld [vmem:[%s898_s0 + $0x50] sm:$0xff]  ;;  %v29_v29 = vld [vmem:[%s898_s0 + $0x58] sm:$0xff] }
  0x16   :  { %v326_v5 = vsel %vm114_vm0, %v298_v60, 0.0  ;;  %v299_v6 = vmul.f32 %v89_v61, %v89_v61  ;;  %v133_v7 = vsel %vm114_vm0, %v104_v0, 0.0  ;;  %v91_v15 = vsub.f32 %v27_v11, %v75_v12  ;;  %v76_v21 = vld [vmem:[%s900_s2 + $0x50] sm:$0xff]  ;;  %v77_v30 = vld [vmem:[%s900_s2 + $0x58] sm:$0xff]  ;;  %v30_v38 = vld [vmem:[%s898_s0 + $0x60] sm:$0xff] }
  0x17   :  { %v105_v8 = vmul.f32 %v57_v1, %v57_v1  ;;  %v300_v17 = vmul.f32 %v90_v9, %v90_v9  ;;  %v106_v18 = vmul.f32 %v58_v10, %v58_v10  ;;  %v59_v19 = vsub.f32 %v27_v11, %v43_v13  ;;  %v44_v22 = vld [vmem:[%s899_s1 + $0x50] sm:$0xff]  ;;  %v45_v31 = vld [vmem:[%s899_s1 + $0x58] sm:$0xff]  ;;  %v78_v39 = vld [vmem:[%s900_s2 + $0x60] sm:$0xff] }
  0x18   :  { %321 = vadd.xlane.f32.xlu1 %v320_v53  ;;  %v329_v14 = vsel %vm114_vm0, %v299_v6, 0.0  ;;  %v92_v23 = vsub.f32 %v28_v20, %v76_v21  ;;  %v60_v24 = vsub.f32 %v28_v20, %v44_v22  ;;  %v301_v27 = vmul.f32 %v91_v15, %v91_v15  ;;  %v46_v40 = vld [vmem:[%s899_s1 + $0x60] sm:$0xff]  ;;  %v31_v47 = vld [vmem:[%s898_s0 + $0x68] sm:$0xff]  ;;  %v32_v56 = vld [vmem:[%s898_s0 + $0x70] sm:$0xff] }
  0x19   :  { %128 = vadd.xlane.f32.xlu0 %v127_v54  ;;  %v136_v16 = vsel %vm114_vm0, %v105_v8, 0.0  ;;  %v332_v25 = vsel %vm114_vm0, %v300_v17, 0.0  ;;  %v139_v26 = vsel %vm114_vm0, %v106_v18, 0.0  ;;  %v107_v28 = vmul.f32 %v59_v19, %v59_v19  ;;  %v79_v48 = vld [vmem:[%s900_s2 + $0x68] sm:$0xff]  ;;  %v80_v57 = vld [vmem:[%s900_s2 + $0x70] sm:$0xff]  ;;  %v33_v1 = vld [vmem:[%s898_s0 + $0x78] sm:$0xff] }
  0x1a   :  { %v302_v32 = vmul.f32 %v92_v23, %v92_v23  ;;  %v93_v33 = vsub.f32 %v29_v29, %v77_v30  ;;  %v335_v34 = vsel %vm114_vm0, %v301_v27, 0.0  ;;  %v108_v36 = vmul.f32 %v60_v24, %v60_v24  ;;  %v47_v49 = vld [vmem:[%s899_s1 + $0x68] sm:$0xff]  ;;  %v48_v58 = vld [vmem:[%s899_s1 + $0x70] sm:$0xff]  ;;  %v81_v2 = vld [vmem:[%s900_s2 + $0x78] sm:$0xff]  ;;  %s531_s0 = smov [#allocation2]   ;;  %s532_s2 = smov [#allocation4]  }
  0x1b   :  { %v142_v35 = vsel %vm114_vm0, %v107_v28, 0.0  ;;  %v61_v37 = vsub.f32 %v29_v29, %v45_v31  ;;  %v94_v45 = vsub.f32 %v30_v38, %v78_v39  ;;  %v62_v46 = vsub.f32 %v30_v38, %v46_v40  ;;  %v49_v3 = vld [vmem:[%s899_s1 + $0x78] sm:$0xff]  ;;  %s459_s1 = sshll.u32 %s531_s0, 4  ;;  %s469_s7 = sshll.u32 %s532_s2, 4  ;;  %s460_s1 = int_to_ptr.vmem [resolvable:$true] %s459_s1  ;;  %s866_s7 = int_to_ptr.vmem [resolvable:$true] %s469_s7 }
  0x1c   :  { %324 = vadd.xlane.f32.xlu1 %v323_v62  ;;  %v338_v41 = vsel %vm114_vm0, %v302_v32, 0.0  ;;  %v303_v42 = vmul.f32 %v93_v33, %v93_v33  ;;  %v145_v43 = vsel %vm114_vm0, %v108_v36, 0.0  ;;  %v95_v51 = vsub.f32 %v31_v47, %v79_v48  ;;  %s483_s8 = scalar_lea.vmem %s460_s1, 16  ;;  %s487_s9 = scalar_lea.vmem %s460_s1, 32 }
  0x1d   :  { %131 = vadd.xlane.f32.xlu0 %v130_v63  ;;  %v109_v44 = vmul.f32 %v61_v37, %v61_v37  ;;  %v304_v53 = vmul.f32 %v94_v45, %v94_v45  ;;  %v110_v54 = vmul.f32 %v62_v46, %v62_v46  ;;  %v63_v55 = vsub.f32 %v31_v47, %v47_v49  ;;  %p484_p0 = scmp.ne.s32.totalorder %s460_s1, %s483_s8  ;;  %p488_p1 = scmp.lt.s32.totalorder %s460_s1, %s460_s1 }
  0x1e   :  { %v341_v50 = vsel %vm114_vm0, %v303_v42, 0.0  ;;  %v96_v59 = vsub.f32 %v32_v56, %v80_v57  ;;  %v64_v60 = vsub.f32 %v32_v56, %v48_v58  ;;  %v305_v63 = vmul.f32 %v95_v51, %v95_v51  ;;  %p489_p2 = scmp.lt.s32.totalorder %s487_s9, %s483_s8 }
  0x1f   :  { %v148_v52 = vsel %vm114_vm0, %v109_v44, 0.0  ;;  %v344_v61 = vsel %vm114_vm0, %v304_v53, 0.0  ;;  %v151_v62 = vsel %vm114_vm0, %v110_v54, 0.0  ;;  %v111_v0 = vmul.f32 %v63_v55, %v63_v55 }
  0x20   :  { %327 = vadd.xlane.f32.xlu1 %v326_v5  ;;  %v306_v4 = vmul.f32 %v96_v59, %v96_v59  ;;  %v97_v5 = vsub.f32 %v33_v1, %v81_v2  ;;  %v347_v6 = vsel %vm114_vm0, %v305_v63, 0.0  ;;  %v112_v8 = vmul.f32 %v64_v60, %v64_v60  ;;  %p490_p3 = por %p489_p2, %p488_p1 }
  0x21   :  { %134 = vadd.xlane.f32.xlu0 %v133_v7  ;;  %v154_v7 = vsel %vm114_vm0, %v111_v0, 0.0  ;;  %v65_v9 = vsub.f32 %v33_v1, %v49_v3  ;;  %v179_v32 = vlaneseq  ;;  %vm204_vm3 = vcmask 261312  }
  0x22   :  { %v350_v10 = vsel %vm114_vm0, %v306_v4, 0.0  ;;  %v157_v11 = vsel %vm114_vm0, %v112_v8, 0.0  ;;  %v307_v12 = vmul.f32 %v97_v5, %v97_v5  ;;  %vm211_vm4 = vcmask 326912   ;;  %p491_p4 = pnand %p490_p3, %p484_p0 }
  0x23   :  { %v113_v13 = vmul.f32 %v65_v9, %v65_v9  ;;  %v182_v36 = vshrl.u32 %v179_v32, 7  ;;  %vm218_vm5 = vcmask 392512   ;;  %vm225_vm6 = vcmask 458112  }
  0x24   :  { %330 = vadd.xlane.f32.xlu1 %v329_v14  ;;  %v353_v14 = vsel %vm114_vm0, %v307_v12, 0.0  ;;  %vm232_vm7 = vcmask 523712   ;;  %vm239_vm8 = vcmask 589312   ;;  %vm246_vm9 = vcmask 654912  }
  0x25   :  { %137 = vadd.xlane.f32.xlu0 %v136_v16  ;;  %v160_v15 = vsel %vm114_vm0, %v113_v13, 0.0  ;;  %vm253_vm10 = vcmask 720512   ;;  %vm260_vm11 = vcmask 786112   ;;  %vm267_vm12 = vcmask 851712  }
  0x26   :  { %vm274_vm13 = vcmask 917312   ;;  %vm281_vm14 = vcmask 982912   ;;  %vm288_vm15 = vcmask 1048512  }
  0x28   :  { %333 = vadd.xlane.f32.xlu1 %v332_v25 }
  0x29   :  { %140 = vadd.xlane.f32.xlu0 %v139_v26 }
  0x2c   :  { %336 = vadd.xlane.f32.xlu1 %v335_v34 }
  0x2d   :  { %143 = vadd.xlane.f32.xlu0 %v142_v35  ;;  %v180_v35 = vand.u32 127, %v179_v32 }
  0x2f   :  { %v185_v37 = vadd.s32 4294967288, %v180_v35  ;;  %v192_v38 = vadd.s32 4294967280, %v180_v35  ;;  %v199_v39 = vadd.s32 4294967272, %v180_v35  ;;  %v206_v42 = vadd.s32 4294967264, %v180_v35 }
  0x30   :  { %339 = vadd.xlane.f32.xlu1 %v338_v41  ;;  %v213_v44 = vadd.s32 4294967256, %v180_v35  ;;  %v220_v46 = vadd.s32 4294967248, %v180_v35  ;;  %v227_v47 = vadd.s32 4294967240, %v180_v35  ;;  %v241_v51 = vadd.s32 4294967224, %v180_v35 }
  0x31   :  { %146 = vadd.xlane.f32.xlu0 %v145_v43  ;;  %v183_v43 = vsub.s32 %v180_v35, %v182_v36  ;;  %v188_v45 = vsub.s32 %v185_v37, %v182_v36  ;;  %v195_v48 = vsub.s32 %v192_v38, %v182_v36  ;;  %v202_v49 = vsub.s32 %v199_v39, %v182_v36 }
  0x32   :  { %v209_v54 = vsub.s32 %v206_v42, %v182_v36  ;;  %v248_v55 = vadd.s32 4294967216, %v180_v35  ;;  %v255_v56 = vadd.s32 4294967208, %v180_v35  ;;  %v216_v57 = vsub.s32 %v213_v44, %v182_v36 }
  0x33   :  { %v262_v58 = vadd.s32 4294967200, %v180_v35  ;;  %v269_v59 = vadd.s32 4294967192, %v180_v35  ;;  %v223_v60 = vsub.s32 %v220_v46, %v182_v36  ;;  %v780_v63 = vsub.s32 %v241_v51, %v182_v36 }
  0x34   :  { %342 = vadd.xlane.f32.xlu1 %v341_v50  ;;  %v234_v50 = vadd.s32 4294967232, %v180_v35  ;;  %v276_v2 = vadd.s32 4294967184, %v180_v35  ;;  %v283_v3 = vadd.s32 4294967176, %v180_v35 }
  0x35   :  { %149 = vadd.xlane.f32.xlu0 %v148_v52 }
  0x36   :  { %v804_v32 = vsub.s32 %v276_v2, %v182_v36  ;;  %v806_v35 = vsub.s32 %v283_v3, %v182_v36 }
  0x38   :  { %345 = vadd.xlane.f32.xlu1 %v344_v61  ;;  %v230_v61 = vsub.s32 %v227_v47, %v182_v36 }
  0x39   :  { %152 = vadd.xlane.f32.xlu0 %v151_v62  ;;  %v778_v62 = vsub.s32 %v234_v50, %v182_v36 }
  0x3c   :  { %348 = vadd.xlane.f32.xlu1 %v347_v6  ;;  %v788_v6 = vsub.s32 %v248_v55, %v182_v36 }
  0x3d   :  { %155 = vadd.xlane.f32.xlu0 %v154_v7  ;;  %v790_v7 = vsub.s32 %v255_v56, %v182_v36 }
  0x40   :  { %351 = vadd.xlane.f32.xlu1 %v350_v10  ;;  %v794_v10 = vsub.s32 %v262_v58, %v182_v36 }
  0x41   :  { %158 = vadd.xlane.f32.xlu0 %v157_v11  ;;  %v796_v11 = vsub.s32 %v269_v59, %v182_v36 }
  0x44   :  { %354 = vadd.xlane.f32.xlu1 %v353_v14 }
  0x45   :  { %161 = vadd.xlane.f32.xlu0 %v160_v15 }
  0x95   :  { %v734_v16 = vpop.xlane.xlu1 %309 }
  0x96   :  { %v736_v17 = vpop.xlane.xlu0 %116  ;;  %v375_v12 = vrot.slane %v734_v16, %v183_v43 }
  0x97   :  { %v184_v13 = vrot.slane %v736_v17, %v183_v43 }
  0x99   :  { %v738_v18 = vpop.xlane.xlu1 %312 }
  0x9a   :  { %v740_v19 = vpop.xlane.xlu0 %119  ;;  %v379_v4 = vrot.slane %v738_v18, %v188_v45 }
  0x9b   :  { %v189_v5 = vrot.slane %v740_v19, %v188_v45 }
  0x9c   :  { %v380_v16 = vsel %vm190_vm1, %v379_v4, %v375_v12 }
  0x9d   :  { %v742_v20 = vpop.xlane.xlu1 %315  ;;  %v191_v17 = vsel %vm190_vm1, %v189_v5, %v184_v13 }
  0x9e   :  { %v744_v21 = vpop.xlane.xlu0 %122  ;;  %v384_v8 = vrot.slane %v742_v20, %v195_v48 }
  0x9f   :  { %v196_v9 = vrot.slane %v744_v21, %v195_v48 }
  0xa1   :  { %v746_v22 = vpop.xlane.xlu1 %318 }
  0xa2   :  { %v748_v23 = vpop.xlane.xlu0 %125  ;;  %v389_v14 = vrot.slane %v746_v22, %v202_v49 }
  0xa3   :  { %v203_v15 = vrot.slane %v748_v23, %v202_v49 }
  0xa5   :  { %v750_v24 = vpop.xlane.xlu1 %321 }
  0xa6   :  { %v752_v25 = vpop.xlane.xlu0 %128  ;;  %v394_v18 = vrot.slane %v750_v24, %v209_v54  ;;  %v385_v24 = vsel %vm197_vm2, %v384_v8, %v380_v16 }
  0xa7   :  { %v210_v19 = vrot.slane %v752_v25, %v209_v54  ;;  %v198_v25 = vsel %vm197_vm2, %v196_v9, %v191_v17  ;;  %v390_v36 = vsel %vm204_vm3, %v389_v14, %v385_v24 }
  0xa8   :  { %v205_v39 = vsel %vm204_vm3, %v203_v15, %v198_v25 }
  0xa9   :  { %v754_v26 = vpop.xlane.xlu1 %324  ;;  %v212_v43 = vsel %vm211_vm4, %v210_v19, %v205_v39 }
  0xaa   :  { %v756_v27 = vpop.xlane.xlu0 %131  ;;  %v399_v22 = vrot.slane %v754_v26, %v216_v57 }
  0xab   :  { %v217_v23 = vrot.slane %v756_v27, %v216_v57  ;;  %v395_v27 = vsel %vm211_vm4, %v394_v18, %v390_v36 }
  0xac   :  { %v400_v46 = vsel %vm218_vm5, %v399_v22, %v395_v27 }
  0xad   :  { %v758_v28 = vpop.xlane.xlu1 %327  ;;  %v219_v47 = vsel %vm218_vm5, %v217_v23, %v212_v43 }
  0xae   :  { %v760_v29 = vpop.xlane.xlu0 %134  ;;  %v404_v37 = vrot.slane %v758_v28, %v223_v60 }
  0xaf   :  { %v224_v38 = vrot.slane %v760_v29, %v223_v60 }
  0xb0   :  { %v405_v48 = vsel %vm225_vm6, %v404_v37, %v400_v46 }
  0xb1   :  { %v762_v30 = vpop.xlane.xlu1 %330  ;;  %v226_v49 = vsel %vm225_vm6, %v224_v38, %v219_v47 }
  0xb2   :  { %v764_v31 = vpop.xlane.xlu0 %137  ;;  %v409_v42 = vrot.slane %v762_v30, %v230_v61 }
  0xb3   :  { %v231_v26 = vrot.slane %v764_v31, %v230_v61 }
  0xb4   :  { %v410_v50 = vsel %vm232_vm7, %v409_v42, %v405_v48 }
  0xb5   :  { %v766_v33 = vpop.xlane.xlu1 %333  ;;  %v233_v51 = vsel %vm232_vm7, %v231_v26, %v226_v49 }
  0xb6   :  { %v768_v34 = vpop.xlane.xlu0 %140  ;;  %v414_v44 = vrot.slane %v766_v33, %v778_v62 }
  0xb7   :  { %v238_v28 = vrot.slane %v768_v34, %v778_v62 }
  0xb8   :  { %v415_v54 = vsel %vm239_vm8, %v414_v44, %v410_v50 }
  0xb9   :  { %v770_v40 = vpop.xlane.xlu1 %336  ;;  %v240_v55 = vsel %vm239_vm8, %v238_v28, %v233_v51 }
  0xba   :  { %v772_v41 = vpop.xlane.xlu0 %143  ;;  %v419_v30 = vrot.slane %v770_v40, %v780_v63 }
  0xbb   :  { %v245_v31 = vrot.slane %v772_v41, %v780_v63 }
  0xbc   :  { %v420_v58 = vsel %vm246_vm9, %v419_v30, %v415_v54 }
  0xbd   :  { %v774_v52 = vpop.xlane.xlu1 %339  ;;  %v247_v59 = vsel %vm246_vm9, %v245_v31, %v240_v55 }
  0xbe   :  { %v776_v53 = vpop.xlane.xlu0 %146  ;;  %v424_v33 = vrot.slane %v774_v52, %v788_v6 }
  0xbf   :  { %v252_v34 = vrot.slane %v776_v53, %v788_v6 }
  0xc0   :  { %v425_v62 = vsel %vm253_vm10, %v424_v33, %v420_v58 }
  0xc1   :  { %v782_v0 = vpop.xlane.xlu1 %342  ;;  %v254_v63 = vsel %vm253_vm10, %v252_v34, %v247_v59 }
  0xc2   :  { %v784_v1 = vpop.xlane.xlu0 %149  ;;  %v429_v40 = vrot.slane %v782_v0, %v790_v7 }
  0xc3   :  { %v259_v41 = vrot.slane %v784_v1, %v790_v7 }
  0xc4   :  { %v430_v2 = vsel %vm260_vm11, %v429_v40, %v425_v62 }
  0xc5   :  { %v346_v20 = vpop.xlane.xlu1 %345  ;;  %v261_v3 = vsel %vm260_vm11, %v259_v41, %v254_v63 }
  0xc6   :  { %v153_v21 = vpop.xlane.xlu0 %152  ;;  %v434_v56 = vrot.slane %v346_v20, %v794_v10 }
  0xc7   :  { %v266_v52 = vrot.slane %v153_v21, %v794_v10 }
  0xc8   :  { %v435_v4 = vsel %vm267_vm12, %v434_v56, %v430_v2 }
  0xc9   :  { %v349_v29 = vpop.xlane.xlu1 %348  ;;  %v268_v5 = vsel %vm267_vm12, %v266_v52, %v261_v3 }
  0xca   :  { %v156_v45 = vpop.xlane.xlu0 %155  ;;  %v439_v60 = vrot.slane %v349_v29, %v796_v11 }
  0xcb   :  { %v273_v61 = vrot.slane %v156_v45, %v796_v11 }
  0xcc   :  { %v440_v8 = vsel %vm274_vm13, %v439_v60, %v435_v4 }
  0xcd   :  { %v352_v57 = vpop.xlane.xlu1 %351  ;;  %v275_v9 = vsel %vm274_vm13, %v273_v61, %v268_v5 }
  0xce   :  { %v159_v53 = vpop.xlane.xlu0 %158  ;;  %v444_v0 = vrot.slane %v352_v57, %v804_v32 }
  0xcf   :  { %v280_v1 = vrot.slane %v159_v53, %v804_v32 }
  0xd0   :  { %v445_v13 = vsel %vm281_vm14, %v444_v0, %v440_v8 }
  0xd1   :  { %v355_v6 = vpop.xlane.xlu1 %354  ;;  %v282_v12 = vsel %vm281_vm14, %v280_v1, %v275_v9 }
  0xd2   :  { %v162_v7 = vpop.xlane.xlu0 %161  ;;  %v449_v10 = vrot.slane %v355_v6, %v806_v35 }
  0xd3   :  { %v287_v11 = vrot.slane %v162_v7, %v806_v35 }
  0xd4   :  { %v450_v15 = vsel %vm288_vm15, %v449_v10, %v445_v13 }
  0xd5   :  { %v289_v14 = vsel %vm288_vm15, %v287_v11, %v282_v12  ;;  %452 = vst [vmem:[#allocation4] sm:$0x1] %v450_v15 }
  0xd6   :  { %291 = vst [vmem:[#allocation2] sm:$0x1] %v289_v14 }
  0xd7   :  { %494 = shalt.err (!%p491_p4)
}
  0xd8   :  { %s495_s12 = scalar_lea.hbm %s901_s3, 16 }
  0xd9   :  { %p496_p5 = scmp.ne.s32.totalorder %s901_s3, %s495_s12  ;;  %p499_p6 = scmp.lt.u32.totalorder %s495_s12, %s901_s3 }
  0xdb   :  { %p501_p7 = pnand %p499_p6, %p496_p5 }
  0xdd   :  { %504 = shalt.err (!%p501_p7)
}
  0xde   :  { %462 = dma.vmem_to_hbm [thread:$0]  %s460_s1, 16, %s901_s3, [#allocation3]  }
  0xdf   :  { %s505_s19 = scalar_lea.vmem %s866_s7, 16  ;;  %s509_s20 = scalar_lea.vmem %s866_s7, 32 }
  0xe0   :  { %p506_p8 = scmp.ne.s32.totalorder %s866_s7, %s505_s19  ;;  %p510_p9 = scmp.lt.s32.totalorder %s866_s7, %s866_s7 }
  0xe1   :  { %p511_p10 = scmp.lt.s32.totalorder %s509_s20, %s505_s19 }
  0xe3   :  { %p512_p11 = por %p511_p10, %p510_p9 }
  0xe5   :  { %p513_p12 = pnand %p512_p11, %p506_p8 }
  0xe7   :  { %516 = shalt.err (!%p513_p12)
}
  0xe8   :  { %s517_s23 = scalar_lea.hbm %s902_s4, 16 }
  0xe9   :  { %p518_p13 = scmp.ne.s32.totalorder %s902_s4, %s517_s23  ;;  %p521_p0 = scmp.lt.u32.totalorder %s517_s23, %s902_s4 }
  0xeb   :  { %p523_p1 = pnand %p521_p0, %p518_p13 }
  0xed   :  { %526 = shalt.err (!%p523_p1)
}
  0xee   :  { %472 = dma.vmem_to_hbm [thread:$0]  %s866_s7, 16, %s902_s4, [#allocation5]  }
  0xef   :  { %527 = dma.done.wait [#allocation3], 16  }
  0xf0   :  { %528 = vsyncadd [#allocation3], 4294967280 }
  0xf1   :  { %529 = dma.done.wait [#allocation5], 16  }
  0xf2   :  { %530 = vsyncadd [#allocation5], 4294967280 }
  0xf3   :  { %479 = vsyncpa [#allocation3], 1 }
  0xf4   :  { %480 = vsyncpa [#allocation5], 1 }

</bundles_post_ra>
